<compile_context>
chip_gen: v7x
topology: tpu7x:2x2x1
jax: 0.10.0
libtpu: 0.0.40
codegen_flags: <defaults>
</compile_context>

<pallas_src>
import functools

import jax
import jax.numpy as jnp
import numpy as np
from jax.experimental import pallas as pl
from jax.experimental.pallas import tpu as pltpu

EPS = 1e-5
_SINGLE_PASS_VMEM_BUDGET = 16 * 1024 * 1024   # per-batch blocks (double-buffered)
_TILED_VMEM_BUDGET = 8 * 1024 * 1024


# ---------------------------------------------------------------------------
# Kernels
# ---------------------------------------------------------------------------
def _fr_single_pass_kernel(inv_s, eps, x_ref, wt_ref, gamma_ref, beta_ref, o_ref):
    """grid = (N,).  Whole downsampled spatial extent on lanes -> one HBM read of the
    gathered input and one write of the normalized output per batch element."""
    xr = jnp.maximum(x_ref[0], 0)                                     # ReLU (VPU)
    # Fused block-diagonal 1x1x1 convs: (O, 2C) @ (2C, S) -> (O, S) on the MXU.
    y = jnp.dot(wt_ref[...], xr, preferred_element_type=jnp.float32)
    mean = jnp.sum(y, axis=-1, keepdims=True) * inv_s                 # (O, 1)
    ex2 = jnp.sum(y * y, axis=-1, keepdims=True) * inv_s
    var = ex2 - mean * mean                                           # biased var
    sc = gamma_ref[...] * jax.lax.rsqrt(var + eps)
    bias = beta_ref[...] - mean * sc
    o_ref[0] = (y * sc + bias).astype(o_ref.dtype)                    # dense stores


def _fr_tiled_kernel(inv_s, eps,
                     x_ref, wt_ref, gamma_ref, beta_ref, o_ref,
                     acc_sum_ref, acc_sq_ref, scale_ref, bias_ref):
    """grid = (N, phase, S-tiles).

    phase 0: y = W @ relu(x_tile); accumulate sum(y), sum(y*y) per lane column.
    phase 1: first tile folds stats + affine into (scale, bias); every tile then
             recomputes y and writes the lane-dense normalized output block.
    """
    p = pl.program_id(1)
    s = pl.program_id(2)

    xr = jnp.maximum(x_ref[0], 0)
    y = jnp.dot(wt_ref[...], xr, preferred_element_type=jnp.float32)  # (O, S_blk)

    @pl.when(p == 0)
    def _accumulate():
        @pl.when(s == 0)
        def _init():
            acc_sum_ref[...] = jnp.zeros_like(acc_sum_ref)
            acc_sq_ref[...] = jnp.zeros_like(acc_sq_ref)

        acc_sum_ref[...] += y
        acc_sq_ref[...] += y * y

    @pl.when(p == 1)
    def _normalize():
        @pl.when(s == 0)
        def _finalize_stats():
            mean = jnp.sum(acc_sum_ref[...], axis=-1, keepdims=True) * inv_s
            ex2 = jnp.sum(acc_sq_ref[...], axis=-1, keepdims=True) * inv_s
            var = ex2 - mean * mean
            sc = gamma_ref[...] * jax.lax.rsqrt(var + eps)
            scale_ref[...] = sc
            bias_ref[...] = beta_ref[...] - mean * sc

        o_ref[0] = (y * scale_ref[...] + bias_ref[...]).astype(o_ref.dtype)


# ---------------------------------------------------------------------------
# Wrapper
# ---------------------------------------------------------------------------
def _pick_tiled_s_block(total_s, bytes_per_lane, budget_bytes=_TILED_VMEM_BUDGET):
    """Largest lane-aligned (multiple-of-128) divisor of S fitting the VMEM budget."""
    if total_s % 128 != 0:
        return total_s                      # full-extent block is always legal
    best = 128
    for d in range(128, total_s + 1, 128):
        if total_s % d == 0 and d * bytes_per_lane <= budget_bytes:
            best = d
    return best


def factorized_reduce_block(x, w1, w2, gamma, beta, *,
                            compute_dtype=jnp.float32, s_block=None, eps=EPS):
    """x: (N, C, D, H, W).  w1: (O1, C), w2: (O2, C) (PyTorch conv layout, kernel dims
    of size 1 squeezed).  gamma/beta: (O1+O2,).
    Returns (N, O1+O2, D/2, H/2, W/2)."""
    N, C, D, H, W = x.shape
    assert D % 2 == 0 and H % 2 == 0 and W % 2 == 0, "spatial dims must be even"
    D2, H2, W2 = D // 2, H // 2, W // 2
    S = D2 * H2 * W2
    O1, O2 = w1.shape[0], w2.shape[0]
    assert w1.shape[1] == C and w2.shape[1] == C
    O = O1 + O2

    # ---- HBM glue: single strided gather (the stride-2 conv footprint), no transpose.
    # Layout (N, 2C, S): channels on sublanes, flattened downsampled spatial on lanes.
    xe = x[:, :, 0::2, 0::2, 0::2].reshape(N, C, S)    # conv_1 taps (even offsets)
    xo = x[:, :, 1::2, 1::2, 1::2].reshape(N, C, S)    # conv_2 taps (odd offsets)
    x_cat = jnp.concatenate([xe, xo], axis=1).astype(compute_dtype)       # (N, 2C, S)

    # ---- Fuse the two 1x1x1 convs into one block-diagonal (O, 2C) weight.
    wt = jnp.zeros((O, 2 * C), dtype=jnp.float32)
    wt = wt.at[:O1, :C].set(w1.astype(jnp.float32))
    wt = wt.at[O1:, C:].set(w2.astype(jnp.float32))
    wt = wt.astype(compute_dtype)

    gamma2 = gamma.reshape(O, 1).astype(jnp.float32)
    beta2 = beta.reshape(O, 1).astype(jnp.float32)

    itemsize = jnp.dtype(compute_dtype).itemsize
    inv_s = 1.0 / float(S)

    # ---- Fast path: whole per-batch spatial extent fits in VMEM -> single pass,
    # input is read from HBM exactly once.
    sp_bytes = (2 * (2 * C) * S * itemsize      # double-buffered input block
                + 2 * O * S * itemsize          # double-buffered output block
                + O * S * 4)                    # f32 y intermediate
    use_single_pass = (s_block is None) and (sp_bytes <= _SINGLE_PASS_VMEM_BUDGET)

    if use_single_pass:
        kernel = functools.partial(_fr_single_pass_kernel, inv_s, float(eps))
        out = pl.pallas_call(
            kernel,
            out_shape=jax.ShapeDtypeStruct((N, O, S), compute_dtype),
            grid_spec=pltpu.PrefetchScalarGridSpec(
                num_scalar_prefetch=0,
                grid=(N,),
                in_specs=[
                    pl.BlockSpec((1, 2 * C, S), lambda n: (n, 0, 0)),
                    pl.BlockSpec((O, 2 * C), lambda n: (0, 0)),
                    pl.BlockSpec((O, 1), lambda n: (0, 0)),
                    pl.BlockSpec((O, 1), lambda n: (0, 0)),
                ],
                out_specs=pl.BlockSpec((1, O, S), lambda n: (n, 0, 0)),
            ),
            compiler_params=pltpu.CompilerParams(
                dimension_semantics=("parallel",),
                vmem_limit_bytes=32 * 1024 * 1024,
            ),
        )(x_cat, wt, gamma2, beta2)
        return out.reshape(N, O, D2, H2, W2)

    # ---- Fallback: two-phase tiled path (stats accumulation, then normalize).
    if s_block is None:
        # double-buffered input + output blocks + f32 stats scratch, per lane column
        bytes_per_lane = 2 * (2 * C) * itemsize + 2 * O * itemsize + 2 * O * 4
        s_block = _pick_tiled_s_block(S, bytes_per_lane)
    assert S % s_block == 0, "s_block must divide the downsampled spatial size"
    n_s_tiles = S // s_block

    kernel = functools.partial(_fr_tiled_kernel, inv_s, float(eps))
    out = pl.pallas_call(
        kernel,
        out_shape=jax.ShapeDtypeStruct((N, O, S), compute_dtype),
        grid_spec=pltpu.PrefetchScalarGridSpec(
            num_scalar_prefetch=0,
            grid=(N, 2, n_s_tiles),                 # (batch, phase, spatial tiles)
            in_specs=[
                pl.BlockSpec((1, 2 * C, s_block), lambda n, p, s: (n, 0, s)),
                pl.BlockSpec((O, 2 * C), lambda n, p, s: (0, 0)),
                pl.BlockSpec((O, 1), lambda n, p, s: (0, 0)),
                pl.BlockSpec((O, 1), lambda n, p, s: (0, 0)),
            ],
            # Block index p*s: stays at tile 0 during the stats phase (no spurious
            # writebacks of unwritten buffers), then walks the tiles once in phase 1.
            out_specs=pl.BlockSpec((1, O, s_block), lambda n, p, s: (n, 0, p * s)),
            scratch_shapes=[
                pltpu.VMEM((O, s_block), jnp.float32),   # sum(y)   lane partials
                pltpu.VMEM((O, s_block), jnp.float32),   # sum(y*y) lane partials
                pltpu.VMEM((O, 1), jnp.float32),         # folded scale
                pltpu.VMEM((O, 1), jnp.float32),         # folded bias
            ],
        ),
        compiler_params=pltpu.CompilerParams(
            dimension_semantics=("parallel", "arbitrary", "arbitrary"),
            vmem_limit_bytes=32 * 1024 * 1024,
        ),
    )(x_cat, wt, gamma2, beta2)

    # Lane-dense (N, O, S) reshapes straight to NCDHW -- no final transpose pass.
    return out.reshape(N, O, D2, H2, W2)


# ---------------------------------------------------------------------------
# Pure-JAX reference mirroring the PyTorch forward.
# ---------------------------------------------------------------------------
def _reference(x, w1, w2, gamma, beta):
    xr = jnp.maximum(x, 0.0)
    xe = xr[:, :, 0::2, 0::2, 0::2]
    xo = xr[:, :, 1::2, 1::2, 1::2]
    hi = jax.lax.Precision.HIGHEST
    y1 = jnp.einsum("ncdhw,oc->nodhw", xe, w1, precision=hi)
    y2 = jnp.einsum("ncdhw,oc->nodhw", xo, w2, precision=hi)
    y = jnp.concatenate([y1, y2], axis=1)
    mean = jnp.mean(y, axis=(2, 3, 4), keepdims=True)
    var = jnp.mean((y - mean) ** 2, axis=(2, 3, 4), keepdims=True)
    yn = (y - mean) / jnp.sqrt(var + EPS)
    return yn * gamma[None, :, None, None, None] + beta[None, :, None, None, None]


if __name__ == "__main__":
    # Module config: in_channel=4, out_channel=6, spatial_dims=3
    N, C_in, D, H, W = 2, 4, 16, 16, 16
    C_out = 6
    O1 = C_out // 2
    O2 = C_out - O1

    key = jax.random.PRNGKey(0)
    k_x, k_w1, k_w2, k_g, k_b = jax.random.split(key, 5)

    x = jax.random.normal(k_x, (N, C_in, D, H, W), dtype=jnp.float32)
    # conv weights in PyTorch layout (out, in) (kernel dims of size 1 squeezed)
    w1 = jax.random.normal(k_w1, (O1, C_in), dtype=jnp.float32) * 0.1
    w2 = jax.random.normal(k_w2, (O2, C_in), dtype=jnp.float32) * 0.1
    gamma = 1.0 + 0.1 * jax.random.normal(k_g, (C_out,), dtype=jnp.float32)
    beta = 0.1 * jax.random.normal(k_b, (C_out,), dtype=jnp.float32)

    ref = _reference(x, w1, w2, gamma, beta)

    # 1) default: f32, single-pass fast path (whole downsampled volume fits in VMEM)
    out = jax.block_until_ready(factorized_reduce_block(x, w1, w2, gamma, beta))
    assert out.shape == (N, C_out, D // 2, H // 2, W // 2)
    np.testing.assert_allclose(np.asarray(out), np.asarray(ref), rtol=1e-4, atol=1e-4)

    # 2) forced S tiling -> exercises the two-phase accumulated instance-norm path
    out_tiled = jax.block_until_ready(
        factorized_reduce_block(x, w1, w2, gamma, beta, s_block=128))
    np.testing.assert_allclose(np.asarray(out_tiled), np.asarray(ref),
                               rtol=1e-4, atol=1e-4)

    # 3) bf16 compute path (halves HBM/VMEM traffic on v6e/v7x); loose tolerance
    out_bf16 = jax.block_until_ready(
        factorized_reduce_block(x, w1, w2, gamma, beta, compute_dtype=jnp.bfloat16))
    np.testing.assert_allclose(np.asarray(out_bf16, dtype=np.float32),
                               np.asarray(ref), rtol=0.0, atol=0.25)

    print("KERNEL_OK")
</pallas_src>

<mosaic_0001>
module attributes {stable_mosaic.version = 11 : i64} {
  func.func @_fr_single_pass_kernel(%arg0: i32, %arg1: memref<1x8x512xf32, #tpu.memory_space<vmem>>, %arg2: memref<6x8xf32, #tpu.memory_space<vmem>>, %arg3: memref<6x1xf32, #tpu.memory_space<vmem>>, %arg4: memref<6x1xf32, #tpu.memory_space<vmem>>, %arg5: memref<1x6x512xf32, #tpu.memory_space<vmem>>) attributes {dimension_semantics = [#tpu.dimension_semantics<parallel>], iteration_bounds = array<i64: 2>, scalar_prefetch = 0 : i64, scratch_operands = 0 : i64, tpu.core_type = #tpu.core_type<tc>, window_params = [{transform_indices = @transform_0, window_bounds = array<i64: 1, 8, 512>}, {pipeline_mode = #tpu.pipeline_mode<synchronous>, transform_indices = @transform_1, window_bounds = array<i64: 6, 8>}, {pipeline_mode = #tpu.pipeline_mode<synchronous>, transform_indices = @transform_2, window_bounds = array<i64: 6, 1>}, {pipeline_mode = #tpu.pipeline_mode<synchronous>, transform_indices = @transform_3, window_bounds = array<i64: 6, 1>}, {transform_indices = @transform_4, window_bounds = array<i64: 1, 6, 512>}]} {
    %c0 = arith.constant 0 : index
    %c0_0 = arith.constant 0 : index
    %c0_1 = arith.constant 0 : index
    %0 = vector.load %arg1[%c0, %c0_0, %c0_1] : memref<1x8x512xf32, #tpu.memory_space<vmem>>, vector<1x8x512xf32>
    %1 = vector.shape_cast %0 : vector<1x8x512xf32> to vector<8x512xf32>
    %cst = arith.constant 0.000000e+00 : f32
    %2 = vector.broadcast %cst : f32 to vector<8x512xf32>
    %3 = arith.maximumf %1, %2 : vector<8x512xf32>
    %c0_2 = arith.constant 0 : index
    %c0_3 = arith.constant 0 : index
    %4 = vector.load %arg2[%c0_2, %c0_3] : memref<6x8xf32, #tpu.memory_space<vmem>>, vector<6x8xf32>
    %cst_4 = arith.constant dense<0.000000e+00> : vector<6x512xf32>
    %5 = tpu.matmul %4, %3, %cst_4 {dimension_numbers = #tpu.dot_dimension_numbers<[1], [0], [0], [1], [0, 0, 1, 1], [], []>} : vector<6x8xf32>, vector<8x512xf32>, vector<6x512xf32> -> vector<6x512xf32>
    %cst_5 = arith.constant dense<0.000000e+00> : vector<6xf32>
    %6 = vector.multi_reduction <add>, %5, %cst_5 [1] : vector<6x512xf32> to vector<6xf32>
    %7 = vector.shape_cast %6 : vector<6xf32> to vector<6x1xf32>
    %cst_6 = arith.constant 0.001953125 : f32
    %8 = vector.broadcast %cst_6 : f32 to vector<6x1xf32>
    %9 = arith.mulf %7, %8 : vector<6x1xf32>
    %10 = arith.mulf %5, %5 : vector<6x512xf32>
    %cst_7 = arith.constant dense<0.000000e+00> : vector<6xf32>
    %11 = vector.multi_reduction <add>, %10, %cst_7 [1] : vector<6x512xf32> to vector<6xf32>
    %12 = vector.shape_cast %11 : vector<6xf32> to vector<6x1xf32>
    %cst_8 = arith.constant 0.001953125 : f32
    %13 = vector.broadcast %cst_8 : f32 to vector<6x1xf32>
    %14 = arith.mulf %12, %13 : vector<6x1xf32>
    %15 = arith.mulf %9, %9 : vector<6x1xf32>
    %16 = arith.subf %14, %15 : vector<6x1xf32>
    %c0_9 = arith.constant 0 : index
    %c0_10 = arith.constant 0 : index
    %17 = vector.load %arg3[%c0_9, %c0_10] : memref<6x1xf32, #tpu.memory_space<vmem>>, vector<6x1xf32>
    %cst_11 = arith.constant 9.99999974E-6 : f32
    %18 = vector.broadcast %cst_11 : f32 to vector<6x1xf32>
    %19 = arith.addf %16, %18 : vector<6x1xf32>
    %20 = math.rsqrt %19 : vector<6x1xf32>
    %21 = arith.mulf %17, %20 : vector<6x1xf32>
    %c0_12 = arith.constant 0 : index
    %c0_13 = arith.constant 0 : index
    %22 = vector.load %arg4[%c0_12, %c0_13] : memref<6x1xf32, #tpu.memory_space<vmem>>, vector<6x1xf32>
    %23 = arith.mulf %9, %21 : vector<6x1xf32>
    %24 = arith.subf %22, %23 : vector<6x1xf32>
    %25 = vector.broadcast %21 : vector<6x1xf32> to vector<6x512xf32>
    %26 = arith.mulf %5, %25 : vector<6x512xf32>
    %27 = vector.broadcast %24 : vector<6x1xf32> to vector<6x512xf32>
    %28 = arith.addf %26, %27 : vector<6x512xf32>
    %c0_14 = arith.constant 0 : index
    %c0_15 = arith.constant 0 : index
    %c0_16 = arith.constant 0 : index
    %29 = vector.load %arg5[%c0_14, %c0_15, %c0_16] : memref<1x6x512xf32, #tpu.memory_space<vmem>>, vector<1x6x512xf32>
    %30 = vector.shape_cast %29 : vector<1x6x512xf32> to vector<6x512xf32>
    %31 = vector.shape_cast %28 : vector<6x512xf32> to vector<1x6x512xf32>
    tpu.vector_store %arg5[%c0_14, %c0_15, %c0_16], %31 {strides = array<i32>} : memref<1x6x512xf32, #tpu.memory_space<vmem>>, vector<1x6x512xf32>,
    return
  }
  func.func @transform_0(%arg0: i32) -> (i32, i32, i32) {
    %c0_i32 = arith.constant 0 : i32
    %c0_i32_0 = arith.constant 0 : i32
    %c0_i32_1 = arith.constant 0 : i32
    return %arg0, %c0_i32, %c0_i32_0 : i32, i32, i32
  }
  func.func @transform_1(%arg0: i32) -> (i32, i32) {
    %c0_i32 = arith.constant 0 : i32
    %c0_i32_0 = arith.constant 0 : i32
    %c0_i32_1 = arith.constant 0 : i32
    return %c0_i32, %c0_i32_0 : i32, i32
  }
  func.func @transform_2(%arg0: i32) -> (i32, i32) {
    %c0_i32 = arith.constant 0 : i32
    %c0_i32_0 = arith.constant 0 : i32
    %c0_i32_1 = arith.constant 0 : i32
    return %c0_i32, %c0_i32_0 : i32, i32
  }
  func.func @transform_3(%arg0: i32) -> (i32, i32) {
    %c0_i32 = arith.constant 0 : i32
    %c0_i32_0 = arith.constant 0 : i32
    %c0_i32_1 = arith.constant 0 : i32
    return %c0_i32, %c0_i32_0 : i32, i32
  }
  func.func @transform_4(%arg0: i32) -> (i32, i32, i32) {
    %c0_i32 = arith.constant 0 : i32
    %c0_i32_0 = arith.constant 0 : i32
    %c0_i32_1 = arith.constant 0 : i32
    return %arg0, %c0_i32, %c0_i32_0 : i32, i32, i32
  }
}

</mosaic_0001>

<bundles_post_ra>
// kernel: tpu_custom_call.1
= control target key start
LH: loop header
LB: loop body
LE: loop exit
PB: predicated region body
PF: predicated region fallthrough
CT: control target
= control target key end

     0   :  { %9 = vsyncpa [#allocation3], 0  ;;  %s773_s0 = inlined_call_operand.hbm [shape: f32[2,8,512], index: 0, kind: input, shape index: {}]   ;;  %s774_s1 = inlined_call_operand.vmem [shape: f32[6,8], index: 1, kind: input, shape index: {}]   ;;  %s775_s2 = inlined_call_operand.vmem [shape: f32[6,1], index: 2, kind: input, shape index: {}]   ;;  %s776_s3 = inlined_call_operand.vmem [shape: f32[6,1], index: 3, kind: input, shape index: {}]   ;;  %s777_s4 = inlined_call_operand.vmem [shape: f32[2,6,512], index: 4, kind: output, shape index: {}]  }
   0x1   :  { %11 = vsyncpa [#allocation3 + $0x1], 0  ;;  %s649_s15 = smov 0   ;;  %s651_s16 = smov 0  }
   0x2   :  { %s653_s17 = smov 0   ;;  %s655_s18 = smov 0  }
   0x3 LB: > { %s668_s19 = sadd.s32 4294967295, %s619_s18   ;;  %s671_s20 = sadd.s32 1, %s619_s18   ;;  %s619_s18 = sphi %s655_s18, %s785_s18   ;;  %s615_s17 = sphi %s653_s17, %s784_s17   ;;  %s611_s16 = sphi %s651_s16, %s783_s16   ;;  %s607_s15 = sphi %s649_s15, %s782_s15  }
   0x4   : > { %s21_s21 = ssub.s32 %s619_s18, %s671_s20  ;;  %s24_s22 = sadd.s32 1, %s615_s17 }
   0x5   : > { %p22_p0 = scmp.eq.s32.totalorder %s21_s21, 0  ;;  %p31_p1 = scmp.ne.s32.totalorder %s615_s17, %s611_s16 }
   0x6   : > { %p32_p2 = scmp.eq.s32.totalorder %s619_s18, 0  ;;  %p37_p3 = scmp.ne.s32.totalorder %s611_s16, %s607_s15 }
   0x7   : > { %s681_s23 = scalar_select %p22_p0, %s615_s17, %s24_s22  }
   0x8   : > { %p33_p4 = por %p32_p2, %p31_p1  ;;  %p38_p5 = scmp.eq.s32.totalorder %s668_s19, 0 }
   0x9   : > { %p516_p6 = scmp.lt.s32.totalorder %s619_s18, 2  ;;  %s159_s25 = sand.u32 1, %s615_s17  }
   0xa   : > { %p685_p7 = por %p38_p5, %p37_p3  ;;  %s497_s26 = sshll.u32 %s159_s25, 5 }
   0xb   : > { %s508_s27 = sshll.u32 %s619_s18, 9  ;;  %s163_s5 = scalar_lea.vmem [#allocation2], %s497_s26 }
   0xc   : > { %s694_s30 = scalar_lea.hbm %s773_s0, %s508_s27  ;;  %s171_s6 = sshll.u32 %s163_s5, 4  ;;  %s696_s6 = int_to_ptr.vmem [resolvable:$true] %s171_s6 }
   0xd   : > { %p698_p8 = pnand %p516_p6, %p33_p4  ;;  %s160_s8 = scalar_lea.sflag [#allocation3], %s159_s25 }
   0xe   : > { %s555_s9 = scalar_lea.hbm %s694_s30, 512  ;;  %s560_s12 = scalar_lea.hbm %s773_s0, 1024 }
   0xf   : > { %p556_p11 = scmp.ne.s32.totalorder %s694_s30, %s555_s9  ;;  %p557_p12 = pneg %p698_p8 }
  0x10   : > { %p561_p1 = scmp.lt.u32.totalorder %s694_s30, %s773_s0  ;;  %p562_p2 = scmp.lt.u32.totalorder %s560_s12, %s555_s9 }
  0x11   : > { %p558_p13 = pnand %p557_p12, %p556_p11  ;;  %p564_p4 = scmp.lt.u32.totalorder %s555_s9, %s694_s30 }
  0x12   : > { %p563_p3 = por %p562_p2, %p561_p1 }
  0x13   : > { %p559_p0 = pneg %p558_p13 }
  0x14   : > { %p565_p5 = por %p564_p4, %p563_p3 }
  0x16   : > { %p566_p6 = pnand %p565_p5, %p559_p0 }
  0x18   : > { %569 = shalt.err (!%p566_p6)
}
  0x19   : > { %s570_s15 = scalar_lea.vmem %s696_s6, 512  ;;  %s621_s21 = smov [#allocation2]  }
  0x1a   : > { %p571_p11 = scmp.ne.s32.totalorder %s696_s6, %s570_s15  ;;  %s575_s22 = sshll.u32 %s621_s21, 4  ;;  %s576_s22 = int_to_ptr.vmem [resolvable:$false] %s575_s22 }
  0x1b   : > { %s577_s25 = scalar_lea.vmem %s576_s22, 1024  ;;  %p578_p10 = scmp.lt.s32.totalorder %s696_s6, %s576_s22 }
  0x1c   : > { %p573_p13 = pnand %p571_p11, %p557_p12  ;;  %p579_p1 = scmp.lt.s32.totalorder %s577_s25, %s570_s15 }
  0x1e   : > { %p574_p9 = pneg %p573_p13  ;;  %p580_p2 = por %p579_p1, %p578_p10 }
  0x20   : > { %p581_p3 = pnand %p580_p2, %p574_p9 }
  0x22   : > { %584 = shalt.err (!%p581_p3)
}
  0x23   : > { %515 = dma.hbm_to_vmem [thread:$0]  (!%p698_p8), %s694_s30, 512, %s696_s6, %s160_s8  }
  0x24   : > { %p780_p0 = scmp.lt.s32.totalorder %s619_s18, 3  ;;  %p781_p4 = scmp.ge.s32.totalorder %s619_s18, 1 }
  0x26   : > { %p177_p12 = pnand %p781_p4, %p780_p0 }
  0x27   : > { %s182_s26 = sand.u32 (!%p177_p12), 1, %s611_s16  }
  0x28   : > { %180 = sbr.rel (%p177_p12) target bundleno = 574 (0x23e), region = 36  ;;  %s501_s27 = sshll.u32 (!%p177_p12), %s182_s26, 5 }
  0x29   : > { %s183_s28 = scalar_lea.sflag (!%p177_p12), [#allocation3], %s182_s26  ;;  %s186_s29 = scalar_lea.vmem (!%p177_p12), [#allocation2], %s501_s27 }
  0x2f   : > { %602 = dma.done.wait (%p685_p7), %s183_s28, 512  }
  0x30   : > { %604 = vsyncadd (%p685_p7), %s183_s28, 4294966784  ;;  %v622_v0 = vmov 0.0   ;;  %v217_v1 = vld [vmem:[%s186_s29 + $0x8] sm:$0xff]  ;;  %v216_v2 = vld [vmem:[%s186_s29] sm:$0xff]  ;;  %vm225_vm0 = vcmask 64512   ;;  %vm371_vm1 = vcmask 1045504  }
  0x31   : > { %293 = vmatprep.mubr.f32.mxu0 %v622_v0  ;;  %364 = vmatprep.mubr.f32.mxu1 %v622_v0  ;;  %v221_v3 = vmax.f32 %v217_v1, 0.0  ;;  %v220_v4 = vmax.f32 %v216_v2, 0.0  ;;  %v219_v5 = vld [vmem:[%s186_s29 + $0x18] sm:$0xff]  ;;  %v218_v6 = vld [vmem:[%s186_s29 + $0x10] sm:$0xff]  ;;  %v224_v7 = vld [vmem:[%s774_s1] sm:$0x3f] }
  0x32   : > { %v223_v8 = vmax.f32 %v219_v5, 0.0  ;;  %v222_v9 = vmax.f32 %v218_v6, 0.0  ;;  %v623_v32 = vmov 0   ;;  %v398_v40 = vld [vmem:[%s775_s2] sm:$0x3f]  ;;  %p211_p7 = scmp.lt.s32.totalorder %s668_s19, 1 }
  0x33   : > { %229 = vmatprep.subr.mxu0 %v221_v3  ;;  %551 = vset.pattern.permute.xlu1 %v623_v32  ;;  %v402_v43 = vld [vmem:[%s776_s3] sm:$0x3f] }
  0x34   : > { %230 = vmatpush1.msra.mxu0 %v220_v4  ;;  %300 = vmatprep.subr.mxu1 %v223_v8  ;;  %s787_s19 = smov (!%p211_p7, %s668_s19), 1 }
  0x35   : > { %504 = vmatmul.mubr.msk.f32.vlgmr.msra.gmra.mrb[0].mxu0 %vm225_vm0, %v224_v7  ;;  %301 = vmatpush1.msra.mxu1 %v222_v9  ;;  %s509_s8 = sshll.u32 %s787_s19, 5 }
  0x36   : > { %505 = vmatmul.mubr.msk.f32.vlgmr.msra.gmra.mrb[0].mxu1 %vm225_vm0, %v224_v7  ;;  %552 = vset.pattern.permute.xlu0 %v623_v32  ;;  %s215_s11 = scalar_lea.vmem %s777_s4, %s509_s8 }
 0x108   : > { %v295_v10 = vpop.f32.mrb[0].mxu0 }
 0x109   : > { %v372_v11 = vsel %vm371_vm1, %v295_v10, 0.0  ;;  %v382_v12 = vmul.f32 %v295_v10, %v295_v10  ;;  %v297_v13 = vpop.f32.mrb[1].mxu0  ;;  %v366_v14 = vpop.f32.mrb[0].mxu1 }
 0x10a   : > { %v373_v15 = vsel %vm371_vm1, %v297_v13, 0.0  ;;  %v383_v16 = vmul.f32 %v297_v13, %v297_v13  ;;  %v384_v17 = vmul.f32 %v366_v14, %v366_v14  ;;  %v368_v18 = vpop.f32.mrb[1].mxu1  ;;  %v375_v19 = vsel %vm371_vm1, %v366_v14, 0.0 }
 0x10b   : > { %v386_v20 = vsel %vm371_vm1, %v382_v12, 0.0  ;;  %v374_v21 = vadd.f32 %v373_v15, %v372_v11  ;;  %v385_v23 = vmul.f32 %v368_v18, %v368_v18  ;;  %v377_v27 = vsel %vm371_vm1, %v368_v18, 0.0 }
 0x10c   : > { %v387_v22 = vsel %vm371_vm1, %v383_v16, 0.0  ;;  %v389_v24 = vsel %vm371_vm1, %v384_v17, 0.0 }
 0x10d   : > { %v388_v25 = vadd.f32 %v387_v22, %v386_v20  ;;  %v376_v26 = vadd.f32 %v375_v19, %v374_v21  ;;  %v391_v30 = vsel %vm371_vm1, %v385_v23, 0.0 }
 0x10f   : > { %v378_v28 = vadd.f32 %v377_v27, %v376_v26  ;;  %v390_v29 = vadd.f32 %v389_v24, %v388_v25 }
 0x111   : > { %379 = vadd.xlane.f32.xlu0 %v378_v28  ;;  %v392_v31 = vadd.f32 %v391_v30, %v390_v29 }
 0x115   : > { %393 = vadd.xlane.f32.xlu0 %v392_v31 }
 0x19e   : > { %v380_v33 = vpop.xlane.xlu0 %379 }
 0x19f   : > { %v381_v34 = vmul.f32 0.001953125, %v380_v33 }
 0x1a1   : > { %v396_v36 = vmul.f32 %v381_v34, %v381_v34 }
 0x1a2   : > { %v394_v35 = vpop.xlane.xlu0 %393 }
 0x1a3   : > { %v395_v37 = vmul.f32 0.001953125, %v394_v35 }
 0x1a5   : > { %v397_v38 = vsub.f32 %v395_v37, %v396_v36 }
 0x1a7   : > { %v399_v39 = vadd.f32 1e-05, %v397_v38 }
 0x1a9   : > { %553 = vrsqrt.f32 %v399_v39 }
 0x1b3   : > { %v554_v41 = vpop.eup %553 }
 0x1b4   : > { %v401_v42 = vmul.f32 %v554_v41, %v398_v40 }
 0x1b6   : > { %407 = vperm.xlu1 %551, %v401_v42   ;;  %v403_v44 = vmul.f32 %v401_v42, %v381_v34 }
 0x1b8   : > { %v404_v45 = vsub.f32 %v402_v43, %v403_v44 }
 0x1ba   : > { %416 = vperm.xlu1 %551, %v404_v45  }
 0x235   : > { %v408_v46 = vpop.permute.xlu1 %407 }
 0x236   : > { %v410_v47 = vmul.f32 %v408_v46, %v295_v10  ;;  %v411_v48 = vmul.f32 %v408_v46, %v297_v13  ;;  %v412_v49 = vmul.f32 %v408_v46, %v366_v14  ;;  %v413_v50 = vmul.f32 %v408_v46, %v368_v18 }
 0x239   : > { %v417_v51 = vpop.permute.xlu1 %416 }
 0x23a   : > { %v419_v52 = vadd.f32 %v417_v51, %v410_v47  ;;  %v420_v53 = vadd.f32 %v417_v51, %v411_v48  ;;  %v421_v54 = vadd.f32 %v417_v51, %v412_v49  ;;  %v422_v55 = vadd.f32 %v417_v51, %v413_v50 }
 0x23c   : > { %423 = vst [vmem:[%s215_s11] sm:$0x3f] %v419_v52  ;;  %424 = vst [vmem:[%s215_s11 + $0x8] sm:$0x3f] %v420_v53 }
 0x23d   : > { %425 = vst [vmem:[%s215_s11 + $0x10] sm:$0x3f] %v421_v54  ;;  %426 = vst [vmem:[%s215_s11 + $0x18] sm:$0x3f] %v422_v55 }
 0x23e PF: > { %p14_p8 = scmp.ge.s32.totalorder %s671_s20, 4   ;;  %s782_s15 = smov %s611_s16 }
 0x23f   : > { %s783_s16 = smov %s615_s17  ;;  %s784_s17 = smov %s681_s23 }
 0x240   : > { %s785_s18 = smov %s671_s20  ;;  %16 = sbr.rel (!%p14_p8) target bundleno = 3 (0x3), region = 76 }
 0x247   :  { %448 = vsyncpa [#allocation3], 1 }
 0x248   :  { %450 = vsyncpa [#allocation3 + $0x1], 1 }

</bundles_post_ra>
